<compile_context>
chip_gen: v6e
topology: v6e:2x2x1
jax: 0.10.0
libtpu: 0.0.40
codegen_flags: <defaults>
</compile_context>

<pallas_src>
import math

import jax
import jax.numpy as jnp
from jax import lax
from jax.experimental import pallas as pl
from jax.experimental.pallas import tpu as pltpu


def _round_up(x, m):
    return (x + m - 1) // m * m


def _cdiv(a, b):
    return (a + b - 1) // b


def _vmem_budget_bytes():
    """Usable per-core VMEM budget (generation-aware, with compiler headroom)."""
    cap = 64 << 20  # conservative default (v7x-sized) if the query fails
    try:
        info = pltpu.get_tpu_info()
        cap = int(getattr(info, "vmem_capacity_bytes", cap)) or cap
    except Exception:
        pass
    # ~25% headroom for compiler internal scratch / semaphores:
    #   128 MiB parts -> 96 MiB budget, 64 MiB parts -> 48 MiB budget.
    return (cap * 3) // 4


# --------------------------------------------------------------------------- #
# Kernels
# --------------------------------------------------------------------------- #
def _mlp_kernel_fused(x_ref, w1_ref, b1_ref, w2_ref, b2_ref, o_ref):
    # x_ref : (tm, Din_p)    bf16
    # w1_ref: (Din_p, Dh_p)  bf16  (fc1 weight, pre-transposed, resident)
    # b1_ref: (1, Dh_p)      f32
    # w2_ref: (Dh_p, Dout_p) bf16  (fc2 weight, pre-transposed, resident)
    # b2_ref: (1, Dout_p)    f32
    # o_ref : (tm, Dout_p)   out_dtype
    h = jnp.dot(x_ref[...], w1_ref[...], preferred_element_type=jnp.float32)
    h = h + b1_ref[...]
    # GELU (tanh approximation -> EUP-friendly). PyTorch nn.GELU default is the
    # exact erf form; max |difference| ~3e-3, below the bf16 matmul noise.
    # TODO(synk): switch to exact erf-GELU if bit-level parity is required.
    h = jax.nn.gelu(h, approximate=True)
    # TODO(synk): nn.Dropout with drop=0.0 (and eval mode) is identity -> omitted.
    y = jnp.dot(h.astype(w2_ref.dtype), w2_ref[...],
                preferred_element_type=jnp.float32)
    o_ref[...] = (y + b2_ref[...]).astype(o_ref.dtype)


def _mlp_kernel_chunked(x_ref, w1_ref, b1_ref, w2_ref, b2_ref, o_ref, acc_ref):
    # Hidden-dim (Dh) chunked reduction: grid = (M tiles, Dh chunks).
    # x_ref : (tm, Din_p)   w1_ref: (Din_p, tk)   b1_ref: (1, tk)
    # w2_ref: (tk, Dout_p)  b2_ref: (1, Dout_p)   acc_ref: (tm, Dout_p) f32
    k = pl.program_id(1)

    @pl.when(k == 0)
    def _init():
        acc_ref[...] = jnp.zeros_like(acc_ref)

    h = jnp.dot(x_ref[...], w1_ref[...], preferred_element_type=jnp.float32)
    h = jax.nn.gelu(h + b1_ref[...], approximate=True)
    acc_ref[...] += jnp.dot(h.astype(w2_ref.dtype), w2_ref[...],
                            preferred_element_type=jnp.float32)

    @pl.when(k == pl.num_programs(1) - 1)
    def _finalize():
        o_ref[...] = (acc_ref[...] + b2_ref[...]).astype(o_ref.dtype)


# --------------------------------------------------------------------------- #
# Wrapper
# --------------------------------------------------------------------------- #
def prepare_mlp_params(w1, b1, w2, b2):
    """One-time weight prep (hoisted out of the per-call path).

    w1: (Dh, Din), b1: (Dh,), w2: (Dout, Dh), b2: (Dout,)  -- nn.Linear layouts.
    Returns padded, pre-transposed bf16 weights + f32 biases.
    """
    Dh, Din = w1.shape
    Dout, Dh2 = w2.shape
    assert Dh == Dh2 and b1.shape == (Dh,) and b2.shape == (Dout,)
    Din_p, Dh_p, Dout_p = (_round_up(d, 128) for d in (Din, Dh, Dout))
    w1_p = jnp.pad(w1.T, ((0, Din_p - Din), (0, Dh_p - Dh))).astype(jnp.bfloat16)
    w2_p = jnp.pad(w2.T, ((0, Dh_p - Dh), (0, Dout_p - Dout))).astype(jnp.bfloat16)
    b1_p = jnp.pad(b1, (0, Dh_p - Dh)).astype(jnp.float32).reshape(1, Dh_p)
    b2_p = jnp.pad(b2, (0, Dout_p - Dout)).astype(jnp.float32).reshape(1, Dout_p)
    return dict(w1=w1_p, b1=b1_p, w2=w2_p, b2=b2_p,
                dims=(Din, Dh, Dout), padded=(Din_p, Dh_p, Dout_p))


def mlp_apply(x, params, *, force_chunked=False, dh_chunk=None):
    """y = gelu(x @ W1 + b1) @ W2 + b2 with prepared params."""
    Din, Dh, Dout = params["dims"]
    Din_p, Dh_p, Dout_p = params["padded"]
    w1_p, b1_p, w2_p, b2_p = params["w1"], params["b1"], params["w2"], params["b2"]

    orig_shape = x.shape
    assert orig_shape[-1] == Din
    M = math.prod(orig_shape[:-1]) if len(orig_shape) > 1 else 1
    out_dtype = x.dtype
    out_bytes = jnp.dtype(out_dtype).itemsize

    budget = _vmem_budget_bytes()

    # ---- row tile: as large as VMEM allows; >=2 grid steps when M permits ----
    tm_cap = 1024 if budget >= (96 << 20) else 512
    tm = min(tm_cap, _round_up(max(M, 1), 16))
    while M > 128 and tm > 128 and _cdiv(M, tm) < 2:
        tm = _round_up(tm // 2, 8)       # keep both v7x TensorCores busy

    def need_fused(tm_):
        return (2 * tm_ * Din_p * 2                    # x tile (bf16, 2 bufs)
                + 2 * tm_ * Dout_p * out_bytes         # out tile (2 bufs)
                + (Din_p * Dh_p + Dh_p * Dout_p) * 2   # weights (single-buffered)
                + (Dh_p + Dout_p) * 4                  # biases  (single-buffered)
                + tm_ * Dh_p * (4 + 2)                 # h: f32 + bf16 copy
                + tm_ * Dout_p * 4)                    # pre-bias f32 y

    def need_chunked(tm_, tk_):
        return (2 * tm_ * Din_p * 2
                + 2 * tm_ * Dout_p * out_bytes
                + 2 * (Din_p * tk_ + tk_ * Dout_p) * 2  # weight chunks (2 bufs)
                + 2 * tk_ * 4 + Dout_p * 4              # bias chunks + b2
                + tm_ * tk_ * (4 + 2)                   # h chunk: f32 + bf16
                + tm_ * Dout_p * 4)                     # f32 accumulator

    tm_floor = min(tm, 128)
    fused_tm = tm
    while fused_tm > tm_floor and need_fused(fused_tm) > budget:
        fused_tm = max(tm_floor, _round_up(fused_tm // 2, 8))
    use_fused = (not force_chunked) and need_fused(fused_tm) <= budget

    # ---- activation prep: lane-pad Din only; M axis stays ragged -------------
    x2 = x.reshape(M, Din)
    if Din_p != Din:
        x2 = jnp.pad(x2, ((0, 0), (0, Din_p - Din)))
    x2 = x2.astype(jnp.bfloat16)

    if use_fused:
        tm = fused_tm
        grid = (_cdiv(M, tm),)
        need = need_fused(tm)
        kernel = _mlp_kernel_fused
        scratch = []
        dims_sem = ("parallel",)

        def make_in_specs(single_buffer_weights):
            kw = dict(pipeline_mode=pl.Buffered(1)) if single_buffer_weights else {}
            return [
                pl.BlockSpec((tm, Din_p), lambda i: (i, 0)),       # x row tile
                pl.BlockSpec((Din_p, Dh_p), lambda i: (0, 0), **kw),   # fc1 W
                pl.BlockSpec((1, Dh_p), lambda i: (0, 0), **kw),       # fc1 b
                pl.BlockSpec((Dh_p, Dout_p), lambda i: (0, 0), **kw),  # fc2 W
                pl.BlockSpec((1, Dout_p), lambda i: (0, 0), **kw),     # fc2 b
            ]

        out_spec = pl.BlockSpec((tm, Dout_p), lambda i: (i, 0))
    else:
        # Resident weights would overflow VMEM: chunk the hidden dimension.
        tk = dh_chunk if dh_chunk is not None else min(Dh_p, 1024)
        tk = max(128, _round_up(min(tk, Dh_p), 128))
        while tk > 128 and need_chunked(tm, tk) > budget:
            tk = max(128, tk // 2)
        while tm > 16 and need_chunked(tm, tk) > budget:
            tm = max(16, _round_up(tm // 2, 8))
        grid = (_cdiv(M, tm), Dh_p // tk)
        need = need_chunked(tm, tk)
        kernel = _mlp_kernel_chunked
        scratch = [pltpu.VMEM((tm, Dout_p), jnp.float32)]
        dims_sem = ("parallel", "arbitrary")

        def make_in_specs(single_buffer_weights):
            kw = dict(pipeline_mode=pl.Buffered(1)) if single_buffer_weights else {}
            return [
                pl.BlockSpec((tm, Din_p), lambda i, k: (i, 0)),    # x row tile
                pl.BlockSpec((Din_p, tk), lambda i, k: (0, k)),    # fc1 W chunk
                pl.BlockSpec((1, tk), lambda i, k: (0, k)),        # fc1 b chunk
                pl.BlockSpec((tk, Dout_p), lambda i, k: (k, 0)),   # fc2 W chunk
                pl.BlockSpec((1, Dout_p), lambda i, k: (0, 0), **kw),  # fc2 b
            ]

        out_spec = pl.BlockSpec((tm, Dout_p), lambda i, k: (i, 0))

    cost = pl.CostEstimate(
        flops=2 * M * (Din_p * Dh_p + Dh_p * Dout_p),
        transcendentals=M * Dh_p,
        bytes_accessed=(x2.size * 2 + w1_p.size * 2 + w2_p.size * 2
                        + b1_p.size * 4 + b2_p.size * 4
                        + M * Dout_p * out_bytes),
    )

    def run(single_buffer_weights):
        compiler_kwargs = dict(dimension_semantics=dims_sem)
        if need + (8 << 20) > (16 << 20):   # may exceed v5e's 16 MiB default scope
            compiler_kwargs["vmem_limit_bytes"] = int(min(need + (8 << 20), budget))
        return pl.pallas_call(
            kernel,
            out_shape=jax.ShapeDtypeStruct((M, Dout_p), out_dtype),
            grid_spec=pltpu.PrefetchScalarGridSpec(
                num_scalar_prefetch=0,
                grid=grid,
                in_specs=make_in_specs(single_buffer_weights),
                out_specs=out_spec,
                scratch_shapes=scratch,
            ),
            compiler_params=pltpu.CompilerParams(**compiler_kwargs),
            cost_estimate=cost,
        )(x2, w1_p, b1_p, w2_p, b2_p)

    try:
        out = run(single_buffer_weights=True)
    except Exception:
        # TODO(synk): single-buffered (pl.Buffered(1)) resident weights are the
        # intended path; fall back to default double-buffering if this JAX
        # build rejects buffer_count=1 for auto-pipelined BlockSpecs.
        out = run(single_buffer_weights=False)

    out = out[:, :Dout]
    return out.reshape(*orig_shape[:-1], Dout)


def mlp_forward(x, w1, b1, w2, b2):
    """Convenience wrapper matching the original signature (preps weights per call)."""
    return mlp_apply(x, prepare_mlp_params(w1, b1, w2, b2))


def _reference_mlp(x, w1, b1, w2, b2):
    """Pure-JAX f32 reference matching PyTorch Mlp (exact erf GELU, drop=0)."""
    h = x @ w1.T + b1
    h = 0.5 * h * (1.0 + lax.erf(h / jnp.sqrt(jnp.float32(2.0))))
    return h @ w2.T + b2


if __name__ == "__main__":
    # Small shapes consistent with the module: tokens (B=2, N=8),
    # in_features=32, hidden_features=64, out_features=32.
    B, N = 2, 8
    in_features, hidden_features, out_features = 32, 64, 32

    key = jax.random.PRNGKey(0)
    kx, kw1, kb1, kw2, kb2 = jax.random.split(key, 5)

    x = jax.random.normal(kx, (B, N, in_features), dtype=jnp.float32)

    bound1 = 1.0 / math.sqrt(in_features)
    w1 = jax.random.uniform(kw1, (hidden_features, in_features),
                            minval=-bound1, maxval=bound1, dtype=jnp.float32)
    b1 = jax.random.uniform(kb1, (hidden_features,),
                            minval=-bound1, maxval=bound1, dtype=jnp.float32)
    bound2 = 1.0 / math.sqrt(hidden_features)
    w2 = jax.random.uniform(kw2, (out_features, hidden_features),
                            minval=-bound2, maxval=bound2, dtype=jnp.float32)
    b2 = jax.random.uniform(kb2, (out_features,),
                            minval=-bound2, maxval=bound2, dtype=jnp.float32)

    # Weight prep hoisted out of the hot path (paid once).
    params = prepare_mlp_params(w1, b1, w2, b2)

    out = jax.block_until_ready(mlp_apply(x, params))
    ref = _reference_mlp(x, w1, b1, w2, b2)
    assert out.shape == (B, N, out_features)
    max_err = float(jnp.max(jnp.abs(out - ref)))
    # bf16 MXU inputs + tanh-GELU approximation -> loose but safe tolerance.
    assert jnp.allclose(out, ref, atol=5e-2, rtol=5e-2), (
        f"fused path mismatch vs reference (max abs err {max_err})")

    # Also exercise the hidden-dim-chunked fallback path (used when resident
    # weights overflow VMEM) at a small shape with two Dh chunks.
    hidden2 = 256
    w1b = jax.random.uniform(kw1, (hidden2, in_features),
                             minval=-bound1, maxval=bound1, dtype=jnp.float32)
    b1b = jax.random.uniform(kb1, (hidden2,),
                             minval=-bound1, maxval=bound1, dtype=jnp.float32)
    bound2b = 1.0 / math.sqrt(hidden2)
    w2b = jax.random.uniform(kw2, (out_features, hidden2),
                             minval=-bound2b, maxval=bound2b, dtype=jnp.float32)
    b2b = jax.random.uniform(kb2, (out_features,),
                             minval=-bound2b, maxval=bound2b, dtype=jnp.float32)
    params_b = prepare_mlp_params(w1b, b1b, w2b, b2b)
    out_b = jax.block_until_ready(
        mlp_apply(x, params_b, force_chunked=True, dh_chunk=128))
    ref_b = _reference_mlp(x, w1b, b1b, w2b, b2b)
    max_err_b = float(jnp.max(jnp.abs(out_b - ref_b)))
    assert jnp.allclose(out_b, ref_b, atol=5e-2, rtol=5e-2), (
        f"chunked path mismatch vs reference (max abs err {max_err_b})")

    print("KERNEL_OK")
</pallas_src>

<mosaic_0001>
module attributes {stable_mosaic.version = 11 : i64} {
  func.func @_mlp_kernel_fused(%arg0: i32, %arg1: memref<16x128xbf16, #tpu.memory_space<vmem>>, %arg2: memref<128x128xbf16, #tpu.memory_space<vmem>>, %arg3: memref<1x128xf32, #tpu.memory_space<vmem>>, %arg4: memref<128x128xbf16, #tpu.memory_space<vmem>>, %arg5: memref<1x128xf32, #tpu.memory_space<vmem>>, %arg6: memref<16x128xf32, #tpu.memory_space<vmem>>) attributes {dimension_semantics = [#tpu.dimension_semantics<parallel>], iteration_bounds = array<i64: 1>, scalar_prefetch = 0 : i64, scratch_operands = 0 : i64, tpu.core_type = #tpu.core_type<tc>, window_params = [{transform_indices = @transform_0, window_bounds = array<i64: 16, 128>}, {pipeline_mode = #tpu.pipeline_mode<synchronous>, transform_indices = @transform_1, window_bounds = array<i64: 128, 128>}, {pipeline_mode = #tpu.pipeline_mode<synchronous>, transform_indices = @transform_2, window_bounds = array<i64: 1, 128>}, {pipeline_mode = #tpu.pipeline_mode<synchronous>, transform_indices = @transform_3, window_bounds = array<i64: 128, 128>}, {pipeline_mode = #tpu.pipeline_mode<synchronous>, transform_indices = @transform_4, window_bounds = array<i64: 1, 128>}, {transform_indices = @transform_5, window_bounds = array<i64: 16, 128>}]} {
    %c0 = arith.constant 0 : index
    %c0_0 = arith.constant 0 : index
    %0 = vector.load %arg1[%c0, %c0_0] : memref<16x128xbf16, #tpu.memory_space<vmem>>, vector<16x128xbf16>
    %c0_1 = arith.constant 0 : index
    %c0_2 = arith.constant 0 : index
    %1 = vector.load %arg2[%c0_1, %c0_2] : memref<128x128xbf16, #tpu.memory_space<vmem>>, vector<128x128xbf16>
    %cst = arith.constant dense<0.000000e+00> : vector<16x128xf32>
    %2 = tpu.matmul %0, %1, %cst {dimension_numbers = #tpu.dot_dimension_numbers<[1], [0], [0], [1], [0, 0, 1, 1], [], []>} : vector<16x128xbf16>, vector<128x128xbf16>, vector<16x128xf32> -> vector<16x128xf32>
    %c0_3 = arith.constant 0 : index
    %c0_4 = arith.constant 0 : index
    %3 = vector.load %arg3[%c0_3, %c0_4] : memref<1x128xf32, #tpu.memory_space<vmem>>, vector<1x128xf32>
    %4 = vector.broadcast %3 : vector<1x128xf32> to vector<16x128xf32>
    %5 = arith.addf %2, %4 : vector<16x128xf32>
    %6 = arith.mulf %5, %5 : vector<16x128xf32>
    %7 = arith.mulf %5, %6 : vector<16x128xf32>
    %cst_5 = arith.constant 4.471500e-02 : f32
    %8 = vector.broadcast %cst_5 : f32 to vector<16x128xf32>
    %9 = arith.mulf %8, %7 : vector<16x128xf32>
    %10 = arith.addf %5, %9 : vector<16x128xf32>
    %cst_6 = arith.constant 0.797884583 : f32
    %11 = vector.broadcast %cst_6 : f32 to vector<16x128xf32>
    %12 = arith.mulf %11, %10 : vector<16x128xf32>
    %13 = math.tanh %12 : vector<16x128xf32>
    %cst_7 = arith.constant 1.000000e+00 : f32
    %14 = vector.broadcast %cst_7 : f32 to vector<16x128xf32>
    %15 = arith.addf %14, %13 : vector<16x128xf32>
    %cst_8 = arith.constant 5.000000e-01 : f32
    %16 = vector.broadcast %cst_8 : f32 to vector<16x128xf32>
    %17 = arith.mulf %16, %15 : vector<16x128xf32>
    %18 = arith.mulf %5, %17 : vector<16x128xf32>
    %19 = arith.truncf %18 : vector<16x128xf32> to vector<16x128xbf16>
    %c0_9 = arith.constant 0 : index
    %c0_10 = arith.constant 0 : index
    %20 = vector.load %arg4[%c0_9, %c0_10] : memref<128x128xbf16, #tpu.memory_space<vmem>>, vector<128x128xbf16>
    %cst_11 = arith.constant dense<0.000000e+00> : vector<16x128xf32>
    %21 = tpu.matmul %19, %20, %cst_11 {dimension_numbers = #tpu.dot_dimension_numbers<[1], [0], [0], [1], [0, 0, 1, 1], [], []>} : vector<16x128xbf16>, vector<128x128xbf16>, vector<16x128xf32> -> vector<16x128xf32>
    %c0_12 = arith.constant 0 : index
    %c0_13 = arith.constant 0 : index
    %22 = vector.load %arg5[%c0_12, %c0_13] : memref<1x128xf32, #tpu.memory_space<vmem>>, vector<1x128xf32>
    %23 = vector.broadcast %22 : vector<1x128xf32> to vector<16x128xf32>
    %24 = arith.addf %21, %23 : vector<16x128xf32>
    %c0_14 = arith.constant 0 : index
    %c0_15 = arith.constant 0 : index
    %25 = vector.load %arg6[%c0_14, %c0_15] : memref<16x128xf32, #tpu.memory_space<vmem>>, vector<16x128xf32>
    tpu.vector_store %arg6[%c0_14, %c0_15], %24 {strides = array<i32>} : memref<16x128xf32, #tpu.memory_space<vmem>>, vector<16x128xf32>,
    return
  }
  func.func @transform_0(%arg0: i32) -> (i32, i32) {
    %c0_i32 = arith.constant 0 : i32
    %c0_i32_0 = arith.constant 0 : i32
    return %arg0, %c0_i32 : i32, i32
  }
  func.func @transform_1(%arg0: i32) -> (i32, i32) {
    %c0_i32 = arith.constant 0 : i32
    %c0_i32_0 = arith.constant 0 : i32
    %c0_i32_1 = arith.constant 0 : i32
    return %c0_i32, %c0_i32_0 : i32, i32
  }
  func.func @transform_2(%arg0: i32) -> (i32, i32) {
    %c0_i32 = arith.constant 0 : i32
    %c0_i32_0 = arith.constant 0 : i32
    %c0_i32_1 = arith.constant 0 : i32
    return %c0_i32, %c0_i32_0 : i32, i32
  }
  func.func @transform_3(%arg0: i32) -> (i32, i32) {
    %c0_i32 = arith.constant 0 : i32
    %c0_i32_0 = arith.constant 0 : i32
    %c0_i32_1 = arith.constant 0 : i32
    return %c0_i32, %c0_i32_0 : i32, i32
  }
  func.func @transform_4(%arg0: i32) -> (i32, i32) {
    %c0_i32 = arith.constant 0 : i32
    %c0_i32_0 = arith.constant 0 : i32
    %c0_i32_1 = arith.constant 0 : i32
    return %c0_i32, %c0_i32_0 : i32, i32
  }
  func.func @transform_5(%arg0: i32) -> (i32, i32) {
    %c0_i32 = arith.constant 0 : i32
    %c0_i32_0 = arith.constant 0 : i32
    return %arg0, %c0_i32 : i32, i32
  }
}

module attributes {stable_mosaic.version = 11 : i64} {
  func.func @_mlp_kernel_fused(%arg0: i32, %arg1: memref<16x128xbf16, #tpu.memory_space<vmem>>, %arg2: memref<128x128xbf16, #tpu.memory_space<vmem>>, %arg3: memref<1x128xf32, #tpu.memory_space<vmem>>, %arg4: memref<128x128xbf16, #tpu.memory_space<vmem>>, %arg5: memref<1x128xf32, #tpu.memory_space<vmem>>, %arg6: memref<16x128xf32, #tpu.memory_space<vmem>>) attributes {dimension_semantics = [#tpu.dimension_semantics<parallel>], iteration_bounds = array<i64: 1>, scalar_prefetch = 0 : i64, scratch_operands = 0 : i64, tpu.core_type = #tpu.core_type<tc>, window_params = [{transform_indices = @transform_0, window_bounds = array<i64: 16, 128>}, {pipeline_mode = #tpu.pipeline_mode<synchronous>, transform_indices = @transform_1, window_bounds = array<i64: 128, 128>}, {pipeline_mode = #tpu.pipeline_mode<synchronous>, transform_indices = @transform_2, window_bounds = array<i64: 1, 128>}, {pipeline_mode = #tpu.pipeline_mode<synchronous>, transform_indices = @transform_3, window_bounds = array<i64: 128, 128>}, {pipeline_mode = #tpu.pipeline_mode<synchronous>, transform_indices = @transform_4, window_bounds = array<i64: 1, 128>}, {transform_indices = @transform_5, window_bounds = array<i64: 16, 128>}]} {
    %c0 = arith.constant 0 : index
    %c0_0 = arith.constant 0 : index
    %0 = vector.load %arg1[%c0, %c0_0] : memref<16x128xbf16, #tpu.memory_space<vmem>>, vector<16x128xbf16>
    %c0_1 = arith.constant 0 : index
    %c0_2 = arith.constant 0 : index
    %1 = vector.load %arg2[%c0_1, %c0_2] : memref<128x128xbf16, #tpu.memory_space<vmem>>, vector<128x128xbf16>
    %cst = arith.constant dense<0.000000e+00> : vector<16x128xf32>
    %2 = tpu.matmul %0, %1, %cst {dimension_numbers = #tpu.dot_dimension_numbers<[1], [0], [0], [1], [0, 0, 1, 1], [], []>} : vector<16x128xbf16>, vector<128x128xbf16>, vector<16x128xf32> -> vector<16x128xf32>
    %c0_3 = arith.constant 0 : index
    %c0_4 = arith.constant 0 : index
    %3 = vector.load %arg3[%c0_3, %c0_4] : memref<1x128xf32, #tpu.memory_space<vmem>>, vector<1x128xf32>
    %4 = vector.broadcast %3 : vector<1x128xf32> to vector<16x128xf32>
    %5 = arith.addf %2, %4 : vector<16x128xf32>
    %6 = arith.mulf %5, %5 : vector<16x128xf32>
    %7 = arith.mulf %5, %6 : vector<16x128xf32>
    %cst_5 = arith.constant 4.471500e-02 : f32
    %8 = vector.broadcast %cst_5 : f32 to vector<16x128xf32>
    %9 = arith.mulf %8, %7 : vector<16x128xf32>
    %10 = arith.addf %5, %9 : vector<16x128xf32>
    %cst_6 = arith.constant 0.797884583 : f32
    %11 = vector.broadcast %cst_6 : f32 to vector<16x128xf32>
    %12 = arith.mulf %11, %10 : vector<16x128xf32>
    %13 = math.tanh %12 : vector<16x128xf32>
    %cst_7 = arith.constant 1.000000e+00 : f32
    %14 = vector.broadcast %cst_7 : f32 to vector<16x128xf32>
    %15 = arith.addf %14, %13 : vector<16x128xf32>
    %cst_8 = arith.constant 5.000000e-01 : f32
    %16 = vector.broadcast %cst_8 : f32 to vector<16x128xf32>
    %17 = arith.mulf %16, %15 : vector<16x128xf32>
    %18 = arith.mulf %5, %17 : vector<16x128xf32>
    %19 = arith.truncf %18 : vector<16x128xf32> to vector<16x128xbf16>
    %c0_9 = arith.constant 0 : index
    %c0_10 = arith.constant 0 : index
    %20 = vector.load %arg4[%c0_9, %c0_10] : memref<128x128xbf16, #tpu.memory_space<vmem>>, vector<128x128xbf16>
    %cst_11 = arith.constant dense<0.000000e+00> : vector<16x128xf32>
    %21 = tpu.matmul %19, %20, %cst_11 {dimension_numbers = #tpu.dot_dimension_numbers<[1], [0], [0], [1], [0, 0, 1, 1], [], []>} : vector<16x128xbf16>, vector<128x128xbf16>, vector<16x128xf32> -> vector<16x128xf32>
    %c0_12 = arith.constant 0 : index
    %c0_13 = arith.constant 0 : index
    %22 = vector.load %arg5[%c0_12, %c0_13] : memref<1x128xf32, #tpu.memory_space<vmem>>, vector<1x128xf32>
    %23 = vector.broadcast %22 : vector<1x128xf32> to vector<16x128xf32>
    %24 = arith.addf %21, %23 : vector<16x128xf32>
    %c0_14 = arith.constant 0 : index
    %c0_15 = arith.constant 0 : index
    %25 = vector.load %arg6[%c0_14, %c0_15] : memref<16x128xf32, #tpu.memory_space<vmem>>, vector<16x128xf32>
    tpu.vector_store %arg6[%c0_14, %c0_15], %24 {strides = array<i32>} : memref<16x128xf32, #tpu.memory_space<vmem>>, vector<16x128xf32>,
    return
  }
  func.func @transform_0(%arg0: i32) -> (i32, i32) {
    %c0_i32 = arith.constant 0 : i32
    %c0_i32_0 = arith.constant 0 : i32
    return %arg0, %c0_i32 : i32, i32
  }
  func.func @transform_1(%arg0: i32) -> (i32, i32) {
    %c0_i32 = arith.constant 0 : i32
    %c0_i32_0 = arith.constant 0 : i32
    %c0_i32_1 = arith.constant 0 : i32
    return %c0_i32, %c0_i32_0 : i32, i32
  }
  func.func @transform_2(%arg0: i32) -> (i32, i32) {
    %c0_i32 = arith.constant 0 : i32
    %c0_i32_0 = arith.constant 0 : i32
    %c0_i32_1 = arith.constant 0 : i32
    return %c0_i32, %c0_i32_0 : i32, i32
  }
  func.func @transform_3(%arg0: i32) -> (i32, i32) {
    %c0_i32 = arith.constant 0 : i32
    %c0_i32_0 = arith.constant 0 : i32
    %c0_i32_1 = arith.constant 0 : i32
    return %c0_i32, %c0_i32_0 : i32, i32
  }
  func.func @transform_4(%arg0: i32) -> (i32, i32) {
    %c0_i32 = arith.constant 0 : i32
    %c0_i32_0 = arith.constant 0 : i32
    %c0_i32_1 = arith.constant 0 : i32
    return %c0_i32, %c0_i32_0 : i32, i32
  }
  func.func @transform_5(%arg0: i32) -> (i32, i32) {
    %c0_i32 = arith.constant 0 : i32
    %c0_i32_0 = arith.constant 0 : i32
    return %arg0, %c0_i32 : i32, i32
  }
}

</mosaic_0001>

<bundles_post_ra>
// kernel: tpu_custom_call.1
= control target key start
LH: loop header
LB: loop body
LE: loop exit
PB: predicated region body
PF: predicated region fallthrough
CT: control target
= control target key end

     0   :  { %10 = vsyncpa [#allocation3], 0  ;;  %s586_s0 = inlined_call_operand.hbm [shape: bf16[16,128], index: 0, kind: input, shape index: {}]   ;;  %s587_s1 = inlined_call_operand.hbm [shape: bf16[128,128], index: 1, kind: input, shape index: {}]   ;;  %s588_s2 = inlined_call_operand.vmem [shape: f32[1,128], index: 2, kind: input, shape index: {}]   ;;  %s589_s3 = inlined_call_operand.hbm [shape: bf16[128,128], index: 3, kind: input, shape index: {}]   ;;  %s590_s4 = inlined_call_operand.vmem [shape: f32[1,128], index: 4, kind: input, shape index: {}]   ;;  %s591_s5 = inlined_call_operand.hbm [shape: f32[16,128], index: 5, kind: output, shape index: {}]  }
   0x1   :  { %11 = vsyncpa [#allocation6], 0 }
   0x2   :  { %12 = vsyncpa [#allocation4], 0  ;;  %s528_s18 = smov [#allocation5]   ;;  %s529_s20 = smov [#allocation2]  }
   0x3   :  { %s30_s19 = sshll.u32 %s528_s18, 4  ;;  %s18_s21 = sshll.u32 %s529_s20, 4  ;;  %s31_s19 = int_to_ptr.vmem [resolvable:$true] %s30_s19  ;;  %s19_s21 = int_to_ptr.vmem [resolvable:$true] %s18_s21 }
   0x4   :  { %s450_s22 = scalar_lea.vmem %s31_s19, 1024  ;;  %p455_p1 = scmp.lt.s32.totalorder %s31_s19, %s31_s19 }
   0x5   :  { %p451_p0 = scmp.ne.s32.totalorder %s31_s19, %s450_s22  ;;  %p456_p2 = scmp.lt.s32.totalorder %s450_s22, %s450_s22 }
   0x7   :  { %p457_p3 = por %p456_p2, %p455_p1 }
   0x9   :  { %p458_p4 = pnand %p457_p3, %p451_p0 }
   0xb   :  { %461 = shalt.err (!%p458_p4)
}
   0xc   :  { %s530_s23 = smov 64   ;;  %s531_s24 = smov 4  }
   0xd   :  { %36 = dma.hbm_to_vmem [thread:$0]  %s587_s1, 1024, %s31_s19, [#allocation6], %s530_s23, %s530_s23, %s531_s24  }
   0xe   :  { %s470_s27 = scalar_lea.vmem %s19_s21, 128  ;;  %p475_p6 = scmp.lt.s32.totalorder %s19_s21, %s19_s21 }
   0xf   :  { %p471_p5 = scmp.ne.s32.totalorder %s19_s21, %s470_s27  ;;  %p476_p7 = scmp.lt.s32.totalorder %s470_s27, %s470_s27 }
  0x11   :  { %p477_p8 = por %p476_p7, %p475_p6 }
  0x13   :  { %p478_p9 = pnand %p477_p8, %p471_p5 }
  0x15   :  { %481 = shalt.err (!%p478_p9)
}
  0x16   :  { %24 = dma.hbm_to_vmem [thread:$0]  %s586_s0, 128, %s19_s21, [#allocation3], %s530_s23, %s530_s23, %s531_s24  }
  0x17   :  { %s532_s30 = smov [#allocation7]  }
  0x18   :  { %s44_s6 = sshll.u32 %s532_s30, 4  ;;  %s45_s6 = int_to_ptr.vmem [resolvable:$true] %s44_s6 }
  0x19   :  { %s490_s7 = scalar_lea.vmem %s45_s6, 1024  ;;  %p495_p11 = scmp.lt.s32.totalorder %s45_s6, %s45_s6 }
  0x1a   :  { %p491_p10 = scmp.ne.s32.totalorder %s45_s6, %s490_s7  ;;  %p496_p12 = scmp.lt.s32.totalorder %s490_s7, %s490_s7 }
  0x1c   :  { %p497_p13 = por %p496_p12, %p495_p11 }
  0x1e   :  { %p498_p0 = pnand %p497_p13, %p491_p10 }
  0x20   :  { %501 = shalt.err (!%p498_p0)
}
  0x21   :  { %50 = dma.hbm_to_vmem [thread:$0]  %s589_s3, 1024, %s45_s6, [#allocation6], %s530_s23, %s530_s23, %s531_s24  }
  0x22   :  { %522 = dma.done.wait [#allocation3], 128  }
  0x23   :  { %523 = vsyncadd [#allocation3], 4294967168 }
  0x24   :  { %524 = dma.done.wait [#allocation6], 2048  }
  0x25   :  { %525 = vsyncadd [#allocation6], 4294965248  ;;  %v533_v0 = vmov 0.0   ;;  %vm534_vm0 = vmmov 0   ;;  %v421_v1 = vld [vmem:[#allocation5 + $0x38] sm:$0xff]   ;;  %v422_v2 = vld [vmem:[#allocation5 + $0x30] sm:$0xff]  }
  0x26   :  { %371 = vmatprep.subr.bf16.mxu0 %v533_v0  ;;  %387 = vmatprep.mubr.msk.bf16.mxu0 %vm534_vm0, %v533_v0  ;;  %v423_v3 = vld [vmem:[#allocation5 + $0x28] sm:$0xff]   ;;  %v424_v4 = vld [vmem:[#allocation5 + $0x20] sm:$0xff]   ;;  %v425_v5 = vld [vmem:[#allocation5 + $0x18] sm:$0xff]   ;;  %s535_s10 = smov [#allocation8]  }
  0x27   :  { %391 = vmatprep.subr.bf16.mxu1 %v533_v0  ;;  %407 = vmatprep.mubr.msk.bf16.mxu1 %vm534_vm0, %v533_v0  ;;  %v426_v6 = vld [vmem:[#allocation5 + $0x10] sm:$0xff]   ;;  %v427_v7 = vld [vmem:[#allocation5 + $0x8] sm:$0xff]   ;;  %v428_v8 = vld [vmem:[#allocation5] sm:$0xff]   ;;  %s321_s11 = sshll.u32 %s535_s10, 4  ;;  %s322_s11 = int_to_ptr.vmem [resolvable:$true] %s321_s11 }
  0x28   :  { %372 = vmatpush3.bf16.msra.mxu0 %v421_v1  ;;  %v429_v9 = vld [vmem:[#allocation2] sm:$0xff]   ;;  %v431_v11 = vld [vmem:[#allocation7 + $0x30] sm:$0xff]   ;;  %v432_v12 = vld [vmem:[#allocation7 + $0x28] sm:$0xff]   ;;  %s502_s12 = scalar_lea.vmem %s322_s11, 256  ;;  %p507_p2 = scmp.lt.s32.totalorder %s322_s11, %s322_s11 }
  0x29   :  { %373 = vmatprep.subr.bf16.mxu0 %v533_v0  ;;  %v430_v10 = vld [vmem:[#allocation7 + $0x38] sm:$0xff]   ;;  %v433_v13 = vld [vmem:[#allocation7 + $0x20] sm:$0xff]   ;;  %v435_v15 = vld [vmem:[#allocation7 + $0x10] sm:$0xff]   ;;  %p503_p1 = scmp.ne.s32.totalorder %s322_s11, %s502_s12  ;;  %p508_p3 = scmp.lt.s32.totalorder %s502_s12, %s502_s12 }
  0x2a   :  { %392 = vmatpush3.bf16.msra.mxu1 %v430_v10  ;;  %v434_v14 = vld [vmem:[#allocation7 + $0x18] sm:$0xff]   ;;  %v436_v16 = vld [vmem:[#allocation7 + $0x8] sm:$0xff]   ;;  %v437_v17 = vld [vmem:[#allocation7] sm:$0xff]  }
  0x2b   :  { %393 = vmatprep.subr.bf16.mxu1 %v533_v0  ;;  %v334_v18 = vld [vmem:[%s588_s2] ss:$0 sm:$0xff]  ;;  %p509_p4 = por %p508_p3, %p507_p2 }
  0x2c   :  { %374 = vmatpush3.bf16.msra.mxu0 %v422_v2  ;;  %v344_v44 = vld [vmem:[%s590_s4] ss:$0 sm:$0xff] }
  0x2d   :  { %375 = vmatprep.subr.bf16.mxu0 %v533_v0  ;;  %p510_p5 = pnand %p509_p4, %p503_p1 }
  0x2e   :  { %394 = vmatpush3.bf16.msra.mxu1 %v431_v11 }
  0x2f   :  { %395 = vmatprep.subr.bf16.mxu1 %v533_v0 }
  0x30   :  { %376 = vmatpush3.bf16.msra.mxu0 %v423_v3 }
  0x31   :  { %377 = vmatprep.subr.bf16.mxu0 %v533_v0 }
  0x32   :  { %396 = vmatpush3.bf16.msra.mxu1 %v432_v12 }
  0x33   :  { %397 = vmatprep.subr.bf16.mxu1 %v533_v0 }
  0x34   :  { %378 = vmatpush3.bf16.msra.mxu0 %v424_v4 }
  0x35   :  { %379 = vmatprep.subr.bf16.mxu0 %v533_v0 }
  0x36   :  { %398 = vmatpush3.bf16.msra.mxu1 %v433_v13 }
  0x37   :  { %399 = vmatprep.subr.bf16.mxu1 %v533_v0 }
  0x38   :  { %380 = vmatpush3.bf16.msra.mxu0 %v425_v5 }
  0x39   :  { %381 = vmatprep.subr.bf16.mxu0 %v533_v0 }
  0x3a   :  { %400 = vmatpush3.bf16.msra.mxu1 %v434_v14 }
  0x3b   :  { %401 = vmatprep.subr.bf16.mxu1 %v533_v0 }
  0x3c   :  { %382 = vmatpush3.bf16.msra.mxu0 %v426_v6 }
  0x3d   :  { %383 = vmatprep.subr.bf16.mxu0 %v533_v0 }
  0x3e   :  { %402 = vmatpush3.bf16.msra.mxu1 %v435_v15 }
  0x3f   :  { %403 = vmatprep.subr.bf16.mxu1 %v533_v0 }
  0x40   :  { %384 = vmatpush3.bf16.msra.mxu0 %v427_v7 }
  0x41   :  { %385 = vmatprep.subr.bf16.mxu0 %v533_v0 }
  0x42   :  { %404 = vmatpush3.bf16.msra.mxu1 %v436_v16 }
  0x43   :  { %405 = vmatprep.subr.bf16.mxu1 %v533_v0 }
  0x44   :  { %386 = vmatpush3.bf16.msra.mxu0 %v428_v8 }
  0x46   :  { %406 = vmatpush3.bf16.msra.mxu1 %v437_v17 }
  0x47   :  { %388 = vmatmul.mubr.bf16.vlgmr.msra.gmra.mxu0 %v429_v9 }
 0x107   :  { %v176_v19 = vpop.f32.mrf.mxu0 }
 0x108   :  { %v177_v20 = vadd.f32 %v334_v18, %v176_v19 }
 0x109   :  { %v389_v21 = vpop.f32.mrf.mxu0 }
 0x10a   :  { %v183_v22 = vmul.f32 %v177_v20, %v177_v20 }
 0x10b   :  { %v179_v23 = vpop.f32.mrf.mxu0 }
 0x10c   :  { %v185_v24 = vmul.f32 %v183_v22, %v177_v20  ;;  %v180_v25 = vadd.f32 %v334_v18, %v179_v23 }
 0x10d   :  { %v390_v26 = vpop.f32.mrf.mxu0 }
 0x10e   :  { %v187_v27 = vmul.f32 0.044715, %v185_v24  ;;  %v184_v28 = vmul.f32 %v180_v25, %v180_v25 }
 0x110   :  { %v189_v29 = vadd.f32 %v187_v27, %v177_v20  ;;  %v186_v30 = vmul.f32 %v184_v28, %v180_v25 }
 0x112   :  { %v191_v31 = vmul.f32 0.7978846, %v189_v29  ;;  %v188_v32 = vmul.f32 0.044715, %v186_v30 }
 0x114   :  { %438 = vtanh.f32 %v191_v31  ;;  %v190_v33 = vadd.f32 %v188_v32, %v180_v25 }
 0x116   :  { %v192_v34 = vmul.f32 0.7978846, %v190_v33 }
 0x118   :  { %440 = vtanh.f32 %v192_v34 }
 0x121   :  { %v439_v35 = vpop.eup %438 }
 0x122   :  { %v195_v36 = vadd.f32 1.0, %v439_v35 }
 0x124   :  { %v197_v39 = vmul.f32 0.5, %v195_v36 }
 0x125   :  { %v441_v37 = vpop.eup %440 }
 0x126   :  { %v196_v38 = vadd.f32 1.0, %v441_v37  ;;  %v199_v41 = vmul.f32 %v197_v39, %v177_v20 }
 0x128   :  { %v198_v40 = vmul.f32 0.5, %v196_v38 }
 0x12a   :  { %v200_v42 = vmul.f32 %v198_v40, %v180_v25 }
 0x12c   :  { %v201_v43 = vpack.c.bf16 %v200_v42, %v199_v41 }
 0x12e   :  { %408 = vmatmul.mubr.bf16.vlgmr.msra.gmra.mxu1 %v201_v43 }
 0x1ee   :  { %v307_v45 = vpop.f32.mrf.mxu1 }
 0x1ef   :  { %v308_v46 = vadd.f32 %v344_v44, %v307_v45 }
 0x1f0   :  { %v409_v47 = vpop.f32.mrf.mxu1 }
 0x1f1   :  { %314 = vst [vmem:[#allocation8] sm:$0xff] %v308_v46 }
 0x1f2   :  { %v310_v48 = vpop.f32.mrf.mxu1 }
 0x1f3   :  { %v311_v49 = vadd.f32 %v344_v44, %v310_v48 }
 0x1f4   :  { %v410_v50 = vpop.f32.mrf.mxu1 }
 0x1f5   :  { %315 = vst [vmem:[#allocation8 + $0x8] sm:$0xff] %v311_v49 }
 0x1f6   :  { %513 = shalt.err (!%p510_p5)
}
 0x1f7   :  { %s536_s13 = smov 128   ;;  %s537_s4 = smov 8  }
 0x1f8   :  { %327 = dma.vmem_to_hbm [thread:$0]  %s322_s11, 256, %s591_s5, [#allocation4], %s536_s13, %s536_s13, %s537_s4  }
 0x1f9   :  { %526 = dma.done.wait [#allocation4], 256  }
 0x1fa   :  { %527 = vsyncadd [#allocation4], 4294967040 }
 0x1fb   :  { %331 = vsyncpa [#allocation3], 1 }
 0x1fc   :  { %332 = vsyncpa [#allocation6], 1 }
 0x1fd   :  { %333 = vsyncpa [#allocation4], 1 }

// kernel: tpu_custom_call.1
= control target key start
LH: loop header
LB: loop body
LE: loop exit
PB: predicated region body
PF: predicated region fallthrough
CT: control target
= control target key end

     0   :  { %10 = vsyncpa [#allocation3], 0  ;;  %s586_s0 = inlined_call_operand.hbm [shape: bf16[16,128], index: 0, kind: input, shape index: {}]   ;;  %s587_s1 = inlined_call_operand.hbm [shape: bf16[128,128], index: 1, kind: input, shape index: {}]   ;;  %s588_s2 = inlined_call_operand.vmem [shape: f32[1,128], index: 2, kind: input, shape index: {}]   ;;  %s589_s3 = inlined_call_operand.hbm [shape: bf16[128,128], index: 3, kind: input, shape index: {}]   ;;  %s590_s4 = inlined_call_operand.vmem [shape: f32[1,128], index: 4, kind: input, shape index: {}]   ;;  %s591_s5 = inlined_call_operand.hbm [shape: f32[16,128], index: 5, kind: output, shape index: {}]  }
   0x1   :  { %11 = vsyncpa [#allocation6], 0 }
   0x2   :  { %12 = vsyncpa [#allocation4], 0  ;;  %s528_s18 = smov [#allocation5]   ;;  %s529_s20 = smov [#allocation2]  }
   0x3   :  { %s30_s19 = sshll.u32 %s528_s18, 4  ;;  %s18_s21 = sshll.u32 %s529_s20, 4  ;;  %s31_s19 = int_to_ptr.vmem [resolvable:$true] %s30_s19  ;;  %s19_s21 = int_to_ptr.vmem [resolvable:$true] %s18_s21 }
   0x4   :  { %s450_s22 = scalar_lea.vmem %s31_s19, 1024  ;;  %p455_p1 = scmp.lt.s32.totalorder %s31_s19, %s31_s19 }
   0x5   :  { %p451_p0 = scmp.ne.s32.totalorder %s31_s19, %s450_s22  ;;  %p456_p2 = scmp.lt.s32.totalorder %s450_s22, %s450_s22 }
   0x7   :  { %p457_p3 = por %p456_p2, %p455_p1 }
   0x9   :  { %p458_p4 = pnand %p457_p3, %p451_p0 }
   0xb   :  { %461 = shalt.err (!%p458_p4)
}
   0xc   :  { %s530_s23 = smov 64   ;;  %s531_s24 = smov 4  }
   0xd   :  { %36 = dma.hbm_to_vmem [thread:$0]  %s587_s1, 1024, %s31_s19, [#allocation6], %s530_s23, %s530_s23, %s531_s24  }
   0xe   :  { %s470_s27 = scalar_lea.vmem %s19_s21, 128  ;;  %p475_p6 = scmp.lt.s32.totalorder %s19_s21, %s19_s21 }
   0xf   :  { %p471_p5 = scmp.ne.s32.totalorder %s19_s21, %s470_s27  ;;  %p476_p7 = scmp.lt.s32.totalorder %s470_s27, %s470_s27 }
  0x11   :  { %p477_p8 = por %p476_p7, %p475_p6 }
  0x13   :  { %p478_p9 = pnand %p477_p8, %p471_p5 }
  0x15   :  { %481 = shalt.err (!%p478_p9)
}
  0x16   :  { %24 = dma.hbm_to_vmem [thread:$0]  %s586_s0, 128, %s19_s21, [#allocation3], %s530_s23, %s530_s23, %s531_s24  }
  0x17   :  { %s532_s30 = smov [#allocation7]  }
  0x18   :  { %s44_s6 = sshll.u32 %s532_s30, 4  ;;  %s45_s6 = int_to_ptr.vmem [resolvable:$true] %s44_s6 }
  0x19   :  { %s490_s7 = scalar_lea.vmem %s45_s6, 1024  ;;  %p495_p11 = scmp.lt.s32.totalorder %s45_s6, %s45_s6 }
  0x1a   :  { %p491_p10 = scmp.ne.s32.totalorder %s45_s6, %s490_s7  ;;  %p496_p12 = scmp.lt.s32.totalorder %s490_s7, %s490_s7 }
  0x1c   :  { %p497_p13 = por %p496_p12, %p495_p11 }
  0x1e   :  { %p498_p0 = pnand %p497_p13, %p491_p10 }
  0x20   :  { %501 = shalt.err (!%p498_p0)
}
  0x21   :  { %50 = dma.hbm_to_vmem [thread:$0]  %s589_s3, 1024, %s45_s6, [#allocation6], %s530_s23, %s530_s23, %s531_s24  }
  0x22   :  { %522 = dma.done.wait [#allocation3], 128  }
  0x23   :  { %523 = vsyncadd [#allocation3], 4294967168 }
  0x24   :  { %524 = dma.done.wait [#allocation6], 2048  }
  0x25   :  { %525 = vsyncadd [#allocation6], 4294965248  ;;  %v533_v0 = vmov 0.0   ;;  %vm534_vm0 = vmmov 0   ;;  %v421_v1 = vld [vmem:[#allocation5 + $0x38] sm:$0xff]   ;;  %v422_v2 = vld [vmem:[#allocation5 + $0x30] sm:$0xff]  }
  0x26   :  { %371 = vmatprep.subr.bf16.mxu0 %v533_v0  ;;  %387 = vmatprep.mubr.msk.bf16.mxu0 %vm534_vm0, %v533_v0  ;;  %v423_v3 = vld [vmem:[#allocation5 + $0x28] sm:$0xff]   ;;  %v424_v4 = vld [vmem:[#allocation5 + $0x20] sm:$0xff]   ;;  %v425_v5 = vld [vmem:[#allocation5 + $0x18] sm:$0xff]   ;;  %s535_s10 = smov [#allocation8]  }
  0x27   :  { %391 = vmatprep.subr.bf16.mxu1 %v533_v0  ;;  %407 = vmatprep.mubr.msk.bf16.mxu1 %vm534_vm0, %v533_v0  ;;  %v426_v6 = vld [vmem:[#allocation5 + $0x10] sm:$0xff]   ;;  %v427_v7 = vld [vmem:[#allocation5 + $0x8] sm:$0xff]   ;;  %v428_v8 = vld [vmem:[#allocation5] sm:$0xff]   ;;  %s321_s11 = sshll.u32 %s535_s10, 4  ;;  %s322_s11 = int_to_ptr.vmem [resolvable:$true] %s321_s11 }
  0x28   :  { %372 = vmatpush3.bf16.msra.mxu0 %v421_v1  ;;  %v429_v9 = vld [vmem:[#allocation2] sm:$0xff]   ;;  %v431_v11 = vld [vmem:[#allocation7 + $0x30] sm:$0xff]   ;;  %v432_v12 = vld [vmem:[#allocation7 + $0x28] sm:$0xff]   ;;  %s502_s12 = scalar_lea.vmem %s322_s11, 256  ;;  %p507_p2 = scmp.lt.s32.totalorder %s322_s11, %s322_s11 }
  0x29   :  { %373 = vmatprep.subr.bf16.mxu0 %v533_v0  ;;  %v430_v10 = vld [vmem:[#allocation7 + $0x38] sm:$0xff]   ;;  %v433_v13 = vld [vmem:[#allocation7 + $0x20] sm:$0xff]   ;;  %v435_v15 = vld [vmem:[#allocation7 + $0x10] sm:$0xff]   ;;  %p503_p1 = scmp.ne.s32.totalorder %s322_s11, %s502_s12  ;;  %p508_p3 = scmp.lt.s32.totalorder %s502_s12, %s502_s12 }
  0x2a   :  { %392 = vmatpush3.bf16.msra.mxu1 %v430_v10  ;;  %v434_v14 = vld [vmem:[#allocation7 + $0x18] sm:$0xff]   ;;  %v436_v16 = vld [vmem:[#allocation7 + $0x8] sm:$0xff]   ;;  %v437_v17 = vld [vmem:[#allocation7] sm:$0xff]  }
  0x2b   :  { %393 = vmatprep.subr.bf16.mxu1 %v533_v0  ;;  %v334_v18 = vld [vmem:[%s588_s2] ss:$0 sm:$0xff]  ;;  %p509_p4 = por %p508_p3, %p507_p2 }
  0x2c   :  { %374 = vmatpush3.bf16.msra.mxu0 %v422_v2  ;;  %v344_v44 = vld [vmem:[%s590_s4] ss:$0 sm:$0xff] }
  0x2d   :  { %375 = vmatprep.subr.bf16.mxu0 %v533_v0  ;;  %p510_p5 = pnand %p509_p4, %p503_p1 }
  0x2e   :  { %394 = vmatpush3.bf16.msra.mxu1 %v431_v11 }
  0x2f   :  { %395 = vmatprep.subr.bf16.mxu1 %v533_v0 }
  0x30   :  { %376 = vmatpush3.bf16.msra.mxu0 %v423_v3 }
  0x31   :  { %377 = vmatprep.subr.bf16.mxu0 %v533_v0 }
  0x32   :  { %396 = vmatpush3.bf16.msra.mxu1 %v432_v12 }
  0x33   :  { %397 = vmatprep.subr.bf16.mxu1 %v533_v0 }
  0x34   :  { %378 = vmatpush3.bf16.msra.mxu0 %v424_v4 }
  0x35   :  { %379 = vmatprep.subr.bf16.mxu0 %v533_v0 }
  0x36   :  { %398 = vmatpush3.bf16.msra.mxu1 %v433_v13 }
  0x37   :  { %399 = vmatprep.subr.bf16.mxu1 %v533_v0 }
  0x38   :  { %380 = vmatpush3.bf16.msra.mxu0 %v425_v5 }
  0x39   :  { %381 = vmatprep.subr.bf16.mxu0 %v533_v0 }
  0x3a   :  { %400 = vmatpush3.bf16.msra.mxu1 %v434_v14 }
  0x3b   :  { %401 = vmatprep.subr.bf16.mxu1 %v533_v0 }
  0x3c   :  { %382 = vmatpush3.bf16.msra.mxu0 %v426_v6 }
  0x3d   :  { %383 = vmatprep.subr.bf16.mxu0 %v533_v0 }
  0x3e   :  { %402 = vmatpush3.bf16.msra.mxu1 %v435_v15 }
  0x3f   :  { %403 = vmatprep.subr.bf16.mxu1 %v533_v0 }
  0x40   :  { %384 = vmatpush3.bf16.msra.mxu0 %v427_v7 }
  0x41   :  { %385 = vmatprep.subr.bf16.mxu0 %v533_v0 }
  0x42   :  { %404 = vmatpush3.bf16.msra.mxu1 %v436_v16 }
  0x43   :  { %405 = vmatprep.subr.bf16.mxu1 %v533_v0 }
  0x44   :  { %386 = vmatpush3.bf16.msra.mxu0 %v428_v8 }
  0x46   :  { %406 = vmatpush3.bf16.msra.mxu1 %v437_v17 }
  0x47   :  { %388 = vmatmul.mubr.bf16.vlgmr.msra.gmra.mxu0 %v429_v9 }
 0x107   :  { %v176_v19 = vpop.f32.mrf.mxu0 }
 0x108   :  { %v177_v20 = vadd.f32 %v334_v18, %v176_v19 }
 0x109   :  { %v389_v21 = vpop.f32.mrf.mxu0 }
 0x10a   :  { %v183_v22 = vmul.f32 %v177_v20, %v177_v20 }
 0x10b   :  { %v179_v23 = vpop.f32.mrf.mxu0 }
 0x10c   :  { %v185_v24 = vmul.f32 %v183_v22, %v177_v20  ;;  %v180_v25 = vadd.f32 %v334_v18, %v179_v23 }
 0x10d   :  { %v390_v26 = vpop.f32.mrf.mxu0 }
 0x10e   :  { %v187_v27 = vmul.f32 0.044715, %v185_v24  ;;  %v184_v28 = vmul.f32 %v180_v25, %v180_v25 }
 0x110   :  { %v189_v29 = vadd.f32 %v187_v27, %v177_v20  ;;  %v186_v30 = vmul.f32 %v184_v28, %v180_v25 }
 0x112   :  { %v191_v31 = vmul.f32 0.7978846, %v189_v29  ;;  %v188_v32 = vmul.f32 0.044715, %v186_v30 }
 0x114   :  { %438 = vtanh.f32 %v191_v31  ;;  %v190_v33 = vadd.f32 %v188_v32, %v180_v25 }
 0x116   :  { %v192_v34 = vmul.f32 0.7978846, %v190_v33 }
 0x118   :  { %440 = vtanh.f32 %v192_v34 }
 0x121   :  { %v439_v35 = vpop.eup %438 }
 0x122   :  { %v195_v36 = vadd.f32 1.0, %v439_v35 }
 0x124   :  { %v197_v39 = vmul.f32 0.5, %v195_v36 }
 0x125   :  { %v441_v37 = vpop.eup %440 }
 0x126   :  { %v196_v38 = vadd.f32 1.0, %v441_v37  ;;  %v199_v41 = vmul.f32 %v197_v39, %v177_v20 }
 0x128   :  { %v198_v40 = vmul.f32 0.5, %v196_v38 }
 0x12a   :  { %v200_v42 = vmul.f32 %v198_v40, %v180_v25 }
 0x12c   :  { %v201_v43 = vpack.c.bf16 %v200_v42, %v199_v41 }
 0x12e   :  { %408 = vmatmul.mubr.bf16.vlgmr.msra.gmra.mxu1 %v201_v43 }
 0x1ee   :  { %v307_v45 = vpop.f32.mrf.mxu1 }
 0x1ef   :  { %v308_v46 = vadd.f32 %v344_v44, %v307_v45 }
 0x1f0   :  { %v409_v47 = vpop.f32.mrf.mxu1 }
 0x1f1   :  { %314 = vst [vmem:[#allocation8] sm:$0xff] %v308_v46 }
 0x1f2   :  { %v310_v48 = vpop.f32.mrf.mxu1 }
 0x1f3   :  { %v311_v49 = vadd.f32 %v344_v44, %v310_v48 }
 0x1f4   :  { %v410_v50 = vpop.f32.mrf.mxu1 }
 0x1f5   :  { %315 = vst [vmem:[#allocation8 + $0x8] sm:$0xff] %v311_v49 }
 0x1f6   :  { %513 = shalt.err (!%p510_p5)
}
 0x1f7   :  { %s536_s13 = smov 128   ;;  %s537_s4 = smov 8  }
 0x1f8   :  { %327 = dma.vmem_to_hbm [thread:$0]  %s322_s11, 256, %s591_s5, [#allocation4], %s536_s13, %s536_s13, %s537_s4  }
 0x1f9   :  { %526 = dma.done.wait [#allocation4], 256  }
 0x1fa   :  { %527 = vsyncadd [#allocation4], 4294967040 }
 0x1fb   :  { %331 = vsyncpa [#allocation3], 1 }
 0x1fc   :  { %332 = vsyncpa [#allocation6], 1 }
 0x1fd   :  { %333 = vsyncpa [#allocation4], 1 }

</bundles_post_ra>
